<compile_context>
chip_gen: v6e
topology: v6e:2x2x1
jax: 0.10.0
libtpu: 0.0.40
codegen_flags: <defaults>
</compile_context>

<pallas_src>
import functools

import jax
import jax.numpy as jnp
from jax.experimental import pallas as pl
from jax.experimental.pallas import tpu as pltpu


_TARGET_BLOCK_BYTES = 4 * 1024 * 1024   # ~4 MiB per block
_VMEM_LIMIT_BYTES = 32 * 1024 * 1024    # 2 in + 2 out buffers x 4 MiB = 16 MiB << limit
_BLOCK_ELEMS_RAGGED = 64 * 1024         # ragged (1, n) fallback block (multiple of 128)
_LANE_WIDTHS = (1024, 512, 256, 128)


def _num_tensorcores():
    """Best-effort TensorCores-per-chip (2 on v7x / v4 / v5p, else 1)."""
    try:
        d = jax.devices()[0]
        nc = getattr(d, "num_cores", None)
        if isinstance(nc, int) and nc > 0:
            return nc
        kind = str(getattr(d, "device_kind", "")).lower()
        if ("v4" in kind) or ("v5p" in kind) or ("v7" in kind) or ("7x" in kind):
            return 2
    except Exception:
        pass
    return 1


def _sine_kernel(x_ref, o_ref, *, w0, der):
    # Purely elementwise: optional VPU mul(s) + one EUP sin/cos per element.
    x = x_ref[...].astype(jnp.float32)            # accurate range reduction for bf16 in
    scaled = x if w0 == 1.0 else w0 * x           # skip identity multiply (trace-time)
    trig = jnp.sin(scaled) if der % 2 == 0 else jnp.cos(scaled)
    coeff = ((-1.0) ** (der // 2)) * (w0 ** der)  # static Python scalar
    out = trig if coeff == 1.0 else coeff * trig  # skip identity multiply (trace-time)
    o_ref[...] = out.astype(o_ref.dtype)


def _choose_block_rows(rows, width, itemsize, multi_core):
    """Dtype-aware block rows for a (rows, width) slab; even grid on 2-TC chips."""
    sub = {4: 8, 2: 16, 1: 32}.get(itemsize, 8)
    target = max(sub, (_TARGET_BLOCK_BYTES // (width * itemsize)) // sub * sub)
    if rows <= target:
        if multi_core and rows >= 2 * sub:
            # Split into two balanced blocks so both TensorCores get work.
            return pl.cdiv(pl.cdiv(rows, 2), sub) * sub
        return rows                        # single block (block dim == full dim is legal)
    grid = pl.cdiv(rows, target)
    if multi_core and grid % 2 == 1:
        grid += 1                          # even grid -> balanced halves across the 2 TCs
        target = max(sub, pl.cdiv(pl.cdiv(rows, grid), sub) * sub)
    return target


def sine(x, w0=1.0, der=0, *, _block_override=None):
    """SIREN Sine activation via a Pallas TPU kernel. Any shape / dtype (f32 / bf16)."""
    w0 = float(w0)
    der = int(der)
    orig_shape = x.shape
    dtype = x.dtype
    n = int(x.size)
    if n == 0:
        return x

    itemsize = jnp.dtype(dtype).itemsize
    multi_core = _num_tensorcores() > 1
    kernel = functools.partial(_sine_kernel, w0=w0, der=der)
    cparams = pltpu.CompilerParams(
        dimension_semantics=("parallel",),
        vmem_limit_bytes=_VMEM_LIMIT_BYTES,
    )

    width = next((w for w in _LANE_WIDTHS if n % w == 0), None)
    if width is not None:
        # Lane-dense 2-D slab via a free (row-major) reshape; no pad, no slice.
        rows = n // width
        x2d = x.reshape(rows, width)
        if _block_override is not None:
            block_rows = _block_override
        else:
            block_rows = _choose_block_rows(rows, width, itemsize, multi_core)
        grid = pl.cdiv(rows, block_rows)   # partial final block masked by Pallas
        out = pl.pallas_call(
            kernel,
            out_shape=jax.ShapeDtypeStruct((rows, width), dtype),
            grid=(grid,),
            in_specs=[pl.BlockSpec((block_rows, width), lambda i: (i, 0))],
            out_specs=pl.BlockSpec((block_rows, width), lambda i: (i, 0)),
            compiler_params=cparams,
        )(x2d)
        return out.reshape(orig_shape)

    # Ragged fallback (n % 128 != 0): single (1, n) row, blocked along lanes.
    # Still no pad / slice; Pallas masks the partial final block.
    flat = x.reshape(1, n)
    if _block_override is not None:
        block = _block_override
    else:
        block = n if n <= _BLOCK_ELEMS_RAGGED else _BLOCK_ELEMS_RAGGED
    grid = pl.cdiv(n, block)
    out = pl.pallas_call(
        kernel,
        out_shape=jax.ShapeDtypeStruct((1, n), dtype),
        grid=(grid,),
        in_specs=[pl.BlockSpec((1, block), lambda i: (0, i))],
        out_specs=pl.BlockSpec((1, block), lambda i: (0, i)),
        compiler_params=cparams,
    )(flat)
    return out.reshape(orig_shape)


def sine_ref(x, w0=1.0, der=0):
    # Pure-JAX reference mirroring the PyTorch forward exactly (f32 compute).
    xf = x.astype(jnp.float32)
    coeff = ((-1.0) ** (der // 2)) * (float(w0) ** der)
    trig = jnp.sin if der % 2 == 0 else jnp.cos
    return (coeff * trig(float(w0) * xf)).astype(x.dtype)


if __name__ == "__main__":
    key = jax.random.PRNGKey(0)
    w0 = 30.0  # typical SIREN w0; module default is 1.0 (also exercised below)
    failures = []

    def check(name, x, *, w0, der, rtol=1e-5, atol=None, **kw):
        out = jax.block_until_ready(sine(x, w0=w0, der=der, **kw))
        ref = sine_ref(x, w0=w0, der=der)
        if atol is None:
            atol = 1e-4 * max(1.0, float(w0) ** der)
        if out.shape != x.shape or out.dtype != x.dtype:
            failures.append(name + ":meta")
            print(f"BAD SHAPE/DTYPE {name}")
        if not jnp.allclose(out.astype(jnp.float32), ref.astype(jnp.float32),
                            rtol=rtol, atol=atol):
            failures.append(name)
            print(f"MISMATCH {name}")

    k0, k1, k2, k3, k4 = jax.random.split(key, 5)

    # SIREN-like hidden activation, f32, all derivative orders.
    x_f32 = jax.random.normal(k0, (8, 128), dtype=jnp.float32)
    for der in (0, 1, 2, 3):
        check(f"f32 (8,128) der={der}", x_f32, w0=w0, der=der)

    # Module default w0 = 1.0 exercises the identity-multiply skip.
    check("f32 (8,128) w0=1 der=0", x_f32, w0=1.0, der=0)

    # Larger aligned slab (grid may be >1 on 2-TC chips).
    x_big = jax.random.normal(k1, (256, 1024), dtype=jnp.float32)
    check("f32 (256,1024) der=0", x_big, w0=w0, der=0)

    # Partial final block in the 2-D path (13 rows, block_rows=8 -> masked tail).
    x_part = jax.random.normal(k2, (13, 1024), dtype=jnp.float32)
    check("f32 (13,1024) partial", x_part, w0=w0, der=2, _block_override=8)

    # Ragged size (n % 128 != 0): (1, n) fallback, single block.
    x_rag = jax.random.normal(k3, (3, 5, 37), dtype=jnp.float32)
    check("f32 (3,5,37) ragged", x_rag, w0=w0, der=1)
    # Same, forced multi-block so the masked partial final lane-block is exercised.
    check("f32 (3,5,37) ragged partial", x_rag, w0=w0, der=1, _block_override=256)

    # bf16 I/O (kernel upcasts to f32 internally for accurate w0*x range reduction).
    x_bf16 = jax.random.normal(k4, (16, 96), dtype=jnp.bfloat16)
    check("bf16 (16,96) der=0", x_bf16, w0=w0, der=0, rtol=2e-2, atol=2e-2)

    if not failures:
        print("KERNEL_OK")
</pallas_src>

<mosaic_0001>
module attributes {stable_mosaic.version = 11 : i64} {
  func.func @_sine_kernel(%arg0: i32, %arg1: memref<1x1024xf32, #tpu.memory_space<vmem>>, %arg2: memref<1x1024xf32, #tpu.memory_space<vmem>>) attributes {dimension_semantics = [#tpu.dimension_semantics<parallel>], iteration_bounds = array<i64: 1>, scalar_prefetch = 0 : i64, scratch_operands = 0 : i64, tpu.core_type = #tpu.core_type<tc>, window_params = [{transform_indices = @transform_0, window_bounds = array<i64: 1, 1024>}, {transform_indices = @transform_1, window_bounds = array<i64: 1, 1024>}]} {
    %c0 = arith.constant 0 : index
    %c0_0 = arith.constant 0 : index
    %0 = vector.load %arg1[%c0, %c0_0] : memref<1x1024xf32, #tpu.memory_space<vmem>>, vector<1x1024xf32>
    %cst = arith.constant 3.000000e+01 : f32
    %1 = vector.broadcast %cst : f32 to vector<1x1024xf32>
    %2 = arith.mulf %1, %0 : vector<1x1024xf32>
    %3 = math.sin %2 : vector<1x1024xf32>
    %c0_1 = arith.constant 0 : index
    %c0_2 = arith.constant 0 : index
    %4 = vector.load %arg2[%c0_1, %c0_2] : memref<1x1024xf32, #tpu.memory_space<vmem>>, vector<1x1024xf32>
    tpu.vector_store %arg2[%c0_1, %c0_2], %3 {strides = array<i32>} : memref<1x1024xf32, #tpu.memory_space<vmem>>, vector<1x1024xf32>,
    return
  }
  func.func @transform_0(%arg0: i32) -> (i32, i32) {
    %c0_i32 = arith.constant 0 : i32
    %c0_i32_0 = arith.constant 0 : i32
    return %arg0, %c0_i32 : i32, i32
  }
  func.func @transform_1(%arg0: i32) -> (i32, i32) {
    %c0_i32 = arith.constant 0 : i32
    %c0_i32_0 = arith.constant 0 : i32
    return %arg0, %c0_i32 : i32, i32
  }
}

</mosaic_0001>

<bundles_post_ra>
// kernel: tpu_custom_call.1
= control target key start
LH: loop header
LB: loop body
LE: loop exit
PB: predicated region body
PF: predicated region fallthrough
CT: control target
= control target key end

     0   :  { %6 = vsyncpa [#allocation3], 0  ;;  %s252_s0 = inlined_call_operand.hbm [shape: f32[1,1024], index: 0, kind: input, shape index: {}]   ;;  %s253_s1 = inlined_call_operand.hbm [shape: f32[1,1024], index: 1, kind: output, shape index: {}]  }
   0x1   :  { %7 = vsyncpa [#allocation4], 0  ;;  %s207_s6 = smov [#allocation2]  }
   0x2   :  { %s14_s7 = sshll.u32 %s207_s6, 4  ;;  %s15_s7 = int_to_ptr.vmem [resolvable:$true] %s14_s7 }
   0x3   :  { %s171_s8 = scalar_lea.vmem %s15_s7, 128  ;;  %p176_p1 = scmp.lt.s32.totalorder %s15_s7, %s15_s7 }
   0x4   :  { %p172_p0 = scmp.ne.s32.totalorder %s15_s7, %s171_s8  ;;  %p177_p2 = scmp.lt.s32.totalorder %s171_s8, %s171_s8 }
   0x6   :  { %p178_p3 = por %p177_p2, %p176_p1 }
   0x8   :  { %p179_p4 = pnand %p178_p3, %p172_p0 }
   0xa   :  { %182 = shalt.err (!%p179_p4)
}
   0xb   :  { %17 = dma.hbm_to_vmem [thread:$0]  %s252_s0, 128, %s15_s7, [#allocation3]  }
   0xc   :  { %203 = dma.done.wait [#allocation3], 128  }
   0xd   :  { %204 = vsyncadd [#allocation3], 4294967168  ;;  %v21_v0 = vld [vmem:[#allocation2] sm:$0xff]  ;;  %v208_v13 = vmov 683565275   ;;  %s214_s0 = smov [#allocation5]  }
   0xe   :  { %v228_v1 = vmul.f32 30.0, %v21_v0  ;;  %v209_v15 = vmov 2475754826   ;;  %v210_v17 = vmov 2131351028   ;;  %s134_s11 = sshll.u32 %s214_s0, 4  ;;  %s135_s11 = int_to_ptr.vmem [resolvable:$true] %s134_s11 }
   0xf   :  { %v211_v19 = vmov 2102212464   ;;  %v212_v21 = vmov 920167782   ;;  %v213_v28 = vmov 1326507024   ;;  %p188_p6 = scmp.lt.s32.totalorder %s135_s11, %s135_s11 }
  0x10   :  { %v26_v2 = vand.u32 2139095040, %v228_v1  ;;  %v23_v4 = vand.u32 2147483647, %v228_v1  ;;  %vm25_vm7 = vcmp.lt.s32.totalorder %v228_v1, 0  ;;  %vm115_vm12 = vweird.f32 %v228_v1  ;;  %s183_s12 = scalar_lea.vmem %s135_s11, 128 }
  0x11   :  { %p184_p5 = scmp.ne.s32.totalorder %s135_s11, %s183_s12  ;;  %p189_p7 = scmp.lt.s32.totalorder %s183_s12, %s183_s12 }
  0x12   :  { %v27_v3 = vshrl.u32 %v26_v2, 23  ;;  %v30_v7 = vand.u32 8388607, %v23_v4  ;;  %vm24_vm8 = vcmp.le.f32.partialorder %v23_v4, 0.7853982 }
  0x13   :  { %p190_p8 = por %p189_p7, %p188_p6 }
  0x14   :  { %v143_v5 = vadd.s32 4294967169, %v27_v3  ;;  %v31_v10 = vor.u32 8388608, %v30_v7 }
  0x15   :  { %p191_p9 = pnand %p190_p8, %p184_p5 }
  0x16   :  { %v33_v6 = vadd.s32 1, %v143_v5  ;;  %v71_v30 = vshll.u32 %v31_v10, 8 }
  0x18   :  { %vm34_vm0 = vcmp.gt.s32.totalorder %v33_v6, 0 }
  0x19   :  { %v35_v8 = vsel %vm34_vm0, %v33_v6, 0 }
  0x1a   :  { %v37_v9 = vand.u32 31, %v35_v8  ;;  %v36_v11 = vshrl.u32 %v35_v8, 5 }
  0x1c   :  { %v38_v12 = vsub.s32 32, %v37_v9  ;;  %v40_v14 = vshll.u32 %v208_v13, %v37_v9  ;;  %v43_v16 = vshll.u32 %v209_v15, %v37_v9  ;;  %v46_v18 = vshll.u32 %v210_v17, %v37_v9 }
  0x1d   :  { %v49_v20 = vshll.u32 %v211_v19, %v37_v9  ;;  %v52_v22 = vshll.u32 %v212_v21, %v37_v9  ;;  %vm55_vm1 = vcmp.lt.s32.totalorder %v36_v11, 1  ;;  %vm58_vm2 = vcmp.lt.s32.totalorder %v36_v11, 4 }
  0x1e   :  { %v39_v23 = vshrl.u32 %v208_v13, %v38_v12  ;;  %v41_v24 = vshrl.u32 %v209_v15, %v38_v12  ;;  %v44_v25 = vshrl.u32 %v210_v17, %v38_v12  ;;  %v47_v26 = vshrl.u32 %v211_v19, %v38_v12 }
  0x1f   :  { %v50_v27 = vshrl.u32 %v212_v21, %v38_v12  ;;  %v53_v29 = vshrl.u32 %v213_v28, %v38_v12  ;;  %vm56_vm3 = vcmp.lt.s32.totalorder %v36_v11, 2  ;;  %vm57_vm4 = vcmp.lt.s32.totalorder %v36_v11, 3 }
  0x20   :  { %v42_v31 = vor.u32 %v41_v24, %v40_v14  ;;  %v45_v32 = vor.u32 %v44_v25, %v43_v16  ;;  %v48_v33 = vor.u32 %v47_v26, %v46_v18 }
  0x21   :  { %v51_v34 = vor.u32 %v50_v27, %v49_v20  ;;  %v54_v35 = vor.u32 %v53_v29, %v52_v22 }
  0x22   :  { %v59_v36 = vsel %vm55_vm1, %v39_v23, %v42_v31  ;;  %v60_v37 = vsel %vm58_vm2, %v48_v33, 2102212464  ;;  %v63_v38 = vsel %vm55_vm1, %v42_v31, %v45_v32  ;;  %v67_v39 = vsel %vm55_vm1, %v45_v32, %v48_v33 }
  0x23   :  { %v61_v40 = vsel %vm57_vm4, %v45_v32, %v60_v37  ;;  %v64_v41 = vsel %vm58_vm2, %v51_v34, 920167782  ;;  %v68_v42 = vsel %vm58_vm2, %v54_v35, 1326507024 }
  0x24   :  { %v65_v43 = vsel %vm57_vm4, %v48_v33, %v64_v41  ;;  %v69_v44 = vsel %vm57_vm4, %v51_v34, %v68_v42  ;;  %v62_v45 = vsel %vm56_vm3, %v59_v36, %v61_v40 }
  0x25   :  { %v66_v46 = vsel %vm56_vm3, %v63_v38, %v65_v43  ;;  %v70_v47 = vsel %vm56_vm3, %v67_v39, %v69_v44  ;;  %v78_v52 = vmul.u32 %v71_v30, %v62_v45 }
  0x26   :  { %v234_v48 = vmul.u32.u64.low %v71_v30, %v70_v47  ;;  %v235_v49 = vmul.u32.u64.high %v71_v30, %v70_v47, %v234_v48  ;;  %v237_v50 = vmul.u32.u64.low %v71_v30, %v66_v46  ;;  %v238_v51 = vmul.u32.u64.high %v71_v30, %v66_v46, %v237_v50 }
  0x28   :  { %vm80_vm5 = vc.u32 %v235_v49, %v237_v50  ;;  %v81_v53 = vadd.s32 1, %v238_v51  ;;  %v79_v0 = vadd.s32 %v237_v50, %v235_v49 }
  0x2a   :  { %v82_v54 = vsel %vm80_vm5, %v81_v53, %v238_v51 }
  0x2b   :  { %v83_v55 = vadd.s32 %v82_v54, %v78_v52 }
  0x2d   :  { %v84_v56 = vadd.s32 536870912, %v83_v55 }
  0x2f   :  { %v85_v57 = vshrl.u32 %v84_v56, 30 }
  0x31   :  { %v86_v58 = vshll.u32 %v85_v57, 30  ;;  %v109_v15 = vsub.s32 4, %v85_v57 }
  0x33   :  { %v87_v59 = vsub.s32 %v83_v55, %v86_v58  ;;  %v110_v18 = vsel %vm25_vm7, %v109_v15, %v85_v57 }
  0x34   :  { %v112_v20 = vsel %vm24_vm8, 0, %v110_v18 }
  0x35   :  { %v89_v60 = vsub.s32 0, %v87_v59  ;;  %v116_v21 = vadd.s32 3, %v112_v20 }
  0x37   :  { %v144_v61 = vmin.u32 %v89_v60, %v87_v59  ;;  %v117_v22 = vand.u32 3, %v116_v21 }
  0x39   :  { %v91_v62 = vclz %v144_v61  ;;  %vm122_vm9 = vcmp.eq.s32.totalorder %v117_v22, 2  ;;  %vm119_vm10 = vcmp.eq.s32.totalorder %v117_v22, 0  ;;  %vm118_vm11 = vcmp.lt.s32.totalorder %v117_v22, 2 }
  0x3b   :  { %v145_v63 = vadd.s32 4294967294, %v91_v62 }
  0x3d   :  { %vm146_vm6 = vcmp.lt.s32.totalorder %v145_v63, 0 }
  0x3e   :  { %v94_v2 = vsel %vm146_vm6, 0, %v145_v63 }
  0x3f   :  { %v95_v3 = vsub.s32 32, %v94_v2  ;;  %v96_v5 = vshll.u32 %v87_v59, %v94_v2  ;;  %v99_v6 = vsub.s32 4294967266, %v94_v2 }
  0x41   :  { %v97_v7 = vshrl.u32 %v79_v0, %v95_v3  ;;  %v100_v8 = vadd.s32 127, %v99_v6 }
  0x43   :  { %v98_v9 = vor.u32 %v97_v7, %v96_v5  ;;  %v101_v10 = vshll.u32 %v100_v8, 23 }
  0x45   :  { %v102_v11 = vor.u32 4788187, %v101_v10  ;;  %v105_v12 = vcvt.s32.f32 %v98_v9 }
  0x47   :  { %v103_v13 = vand.u32 2147483647, %v102_v11 }
  0x49   :  { %v106_v14 = vmul.f32 %v105_v12, %v103_v13 }
  0x4b   :  { %v107_v16 = vxor.u32 2147483648, %v106_v14 }
  0x4d   :  { %v108_v17 = vsel %vm25_vm7, %v107_v16, %v106_v14 }
  0x4e   :  { %v111_v19 = vsel %vm24_vm8, %v228_v1, %v108_v17 }
  0x4f   :  { %159 = vcosq.f32 %v111_v19 }
  0x50   :  { %161 = vsinq.f32 %v111_v19 }
  0x5c   :  { %v160_v23 = vpop.eup %159 }
  0x5d   :  { %v162_v24 = vpop.eup %161  ;;  %v123_v25 = vxor.u32 2147483648, %v160_v23 }
  0x5e   :  { %v120_v26 = vxor.u32 2147483648, %v162_v24 }
  0x5f   :  { %v124_v4 = vsel %vm122_vm9, %v123_v25, %v162_v24 }
  0x60   :  { %v121_v27 = vsel %vm119_vm10, %v160_v23, %v120_v26 }
  0x61   :  { %v125_v28 = vsel %vm118_vm11, %v121_v27, %v124_v4 }
  0x62   :  { %v126_v29 = vsel %vm115_vm12, nan, %v125_v28 }
  0x63   :  { %127 = vst [vmem:[#allocation5] sm:$0xff] %v126_v29 }
  0x64   :  { %194 = shalt.err (!%p191_p9)
}
  0x65   :  { %137 = dma.vmem_to_hbm [thread:$0]  %s135_s11, 128, %s253_s1, [#allocation4]  }
  0x66   :  { %205 = dma.done.wait [#allocation4], 128  }
  0x67   :  { %206 = vsyncadd [#allocation4], 4294967168 }
  0x68   :  { %141 = vsyncpa [#allocation3], 1 }
  0x69   :  { %142 = vsyncpa [#allocation4], 1 }

</bundles_post_ra>
